<compile_context>
chip_gen: v7x
topology: tpu7x:2x2x1
jax: 0.10.0
libtpu: 0.0.40
codegen_flags: <defaults>
</compile_context>

<pallas_src>
import jax
import jax.numpy as jnp
from jax.experimental import pallas as pl
from jax.experimental.pallas import tpu as pltpu

# Logical (PyTorch) sizes.
IN_CH = 21 * 2     # 42
H1 = 500
H2 = 300
NUM_CLS = 16

# Padded, hardware-friendly sizes (lane dims multiples of 128).
IN_P = 128
H1_P = 512
H2_P = 384          # 300 -> 3 x 128 (was 512)
OUT_P = 128


def _round_up(x, m):
    return (x + m - 1) // m * m


def mlp_kernel(x_ref, w1_ref, b1_ref, w2_ref, b2_ref, w3_ref, b3_ref, o_ref):
    # x tile: (TB, IN_P) bf16. Weights: bf16 MXU operands. Biases: f32.
    # Matmuls accumulate in f32; bias-add / ReLU stay f32 on the VPU.
    x = x_ref[...]
    h1 = jnp.dot(x, w1_ref[...], preferred_element_type=jnp.float32) + b1_ref[...]
    h1 = jnp.maximum(h1, 0.0)
    h2 = jnp.dot(h1.astype(jnp.bfloat16), w2_ref[...],
                 preferred_element_type=jnp.float32) + b2_ref[...]
    h2 = jnp.maximum(h2, 0.0)
    out = jnp.dot(h2.astype(jnp.bfloat16), w3_ref[...],
                  preferred_element_type=jnp.float32) + b3_ref[...]
    o_ref[...] = out.astype(o_ref.dtype)


def prepare_params(w1, b1, w2, b2, w3, b3):
    """Zero-pad weights/biases to padded shapes once; weights -> bf16.

    Zero padding is exact through matmul + ReLU (padded biases are zero), so
    the padded network computes exactly the logical one on the first NUM_CLS
    output columns.
    """
    def pad_w(w, rows, cols):
        w = jnp.pad(w, ((0, rows - w.shape[0]), (0, cols - w.shape[1])))
        return w.astype(jnp.bfloat16)

    def pad_b(b, cols):
        b = jnp.asarray(b, jnp.float32).reshape(1, -1)
        return jnp.pad(b, ((0, 0), (0, cols - b.shape[1])))

    return (pad_w(w1, IN_P, H1_P), pad_b(b1, H1_P),
            pad_w(w2, H1_P, H2_P), pad_b(b2, H2_P),
            pad_w(w3, H2_P, OUT_P), pad_b(b3, OUT_P))


def mlp_forward(x, padded_params, *, batch_tile=1024):
    """x: (B, IN_CH) f32. padded_params: output of prepare_params.

    Returns (B, NUM_CLS) f32 logits.
    """
    B = x.shape[0]
    batch_tile = max(16, _round_up(batch_tile, 16))

    # Batch tile: multiple of 16 (bf16 sublane packing), and small enough that
    # the grid has >=2 steps whenever B allows it (v7x dual-core sharding).
    half = _round_up(max((B + 1) // 2, 16), 16)
    tb = min(batch_tile, half)
    Bp = _round_up(B, tb)

    # Pad + cast fused by XLA into a single producer; x enters the kernel as
    # bf16 (half the DMA bytes of f32).
    xp = jnp.pad(x, ((0, Bp - B), (0, IN_P - x.shape[1]))).astype(jnp.bfloat16)

    w1, b1, w2, b2, w3, b3 = padded_params

    # Weights/biases: full-array blocks, constant index map -> loaded once and
    # kept resident in VMEM across all batch tiles.
    def full(shape):
        return pl.BlockSpec(shape, lambda i: (0, 0))

    out_padded = pl.pallas_call(
        mlp_kernel,
        out_shape=jax.ShapeDtypeStruct((Bp, OUT_P), jnp.bfloat16),
        grid_spec=pltpu.PrefetchScalarGridSpec(
            num_scalar_prefetch=0,
            grid=(Bp // tb,),
            in_specs=[
                pl.BlockSpec((tb, IN_P), lambda i: (i, 0)),   # x: tiled over batch
                full((IN_P, H1_P)), full((1, H1_P)),
                full((H1_P, H2_P)), full((1, H2_P)),
                full((H2_P, OUT_P)), full((1, OUT_P)),
            ],
            out_specs=pl.BlockSpec((tb, OUT_P), lambda i: (i, 0)),
        ),
        compiler_params=pltpu.CompilerParams(
            dimension_semantics=("parallel",),
            vmem_limit_bytes=32 * 1024 * 1024),
    )(xp, w1, b1, w2, b2, w3, b3)

    return out_padded[:B, :NUM_CLS].astype(jnp.float32)


def init_params(key, in_ch=IN_CH, num_cls=NUM_CLS):
    """Deterministic init mimicking nn.Linear (weights stored as (in, out))."""
    ks = jax.random.split(key, 6)

    def linear(kw, kb, fan_in, fan_out):
        bound = 1.0 / jnp.sqrt(fan_in)
        w = jax.random.uniform(kw, (fan_in, fan_out), jnp.float32, -bound, bound)
        b = jax.random.uniform(kb, (1, fan_out), jnp.float32, -bound, bound)
        return w, b

    w1, b1 = linear(ks[0], ks[1], in_ch, H1)
    w2, b2 = linear(ks[2], ks[3], H1, H2)
    w3, b3 = linear(ks[4], ks[5], H2, num_cls)
    return w1, b1, w2, b2, w3, b3


if __name__ == "__main__":
    key = jax.random.PRNGKey(0)
    k_x, k_p = jax.random.split(key)

    batch = 8
    x = jax.random.normal(k_x, (batch, IN_CH), jnp.float32)
    raw_params = init_params(k_p)
    params = prepare_params(*raw_params)

    out = mlp_forward(x, params)
    out = jax.block_until_ready(out)
    assert out.shape == (batch, NUM_CLS)

    w1, b1, w2, b2, w3, b3 = raw_params

    # Reference 1: mirrors the kernel's bf16-operand / f32-accumulate math
    # (including the bf16 output store).
    def bf(a):
        return a.astype(jnp.bfloat16)

    h = jnp.maximum(jnp.dot(bf(x), bf(w1), preferred_element_type=jnp.float32) + b1, 0.0)
    h = jnp.maximum(jnp.dot(bf(h), bf(w2), preferred_element_type=jnp.float32) + b2, 0.0)
    ref_bf16 = jnp.dot(bf(h), bf(w3), preferred_element_type=jnp.float32) + b3
    ref_bf16 = ref_bf16.astype(jnp.bfloat16).astype(jnp.float32)
    assert jnp.allclose(out, ref_bf16, atol=2e-3, rtol=2e-2), (
        "max|diff| vs bf16 ref = %f" % float(jnp.max(jnp.abs(out - ref_bf16))))

    # Reference 2: pure f32 math (PyTorch semantics); bf16-level tolerance.
    # Intentional precision contract: bf16 weights/activations on the MXU with
    # f32 accumulation, bf16 logit store.
    ref_f32 = jnp.maximum(x @ w1 + b1, 0.0)
    ref_f32 = jnp.maximum(ref_f32 @ w2 + b2, 0.0)
    ref_f32 = ref_f32 @ w3 + b3
    assert jnp.allclose(out, ref_f32, atol=5e-2, rtol=5e-2), (
        "max|diff| vs f32 ref = %f" % float(jnp.max(jnp.abs(out - ref_f32))))

    print("KERNEL_OK")
</pallas_src>

<mosaic_0001>
module attributes {stable_mosaic.version = 11 : i64} {
  func.func @mlp_kernel(%arg0: i32, %arg1: memref<16x128xbf16, #tpu.memory_space<vmem>>, %arg2: memref<128x512xbf16, #tpu.memory_space<vmem>>, %arg3: memref<1x512xf32, #tpu.memory_space<vmem>>, %arg4: memref<512x384xbf16, #tpu.memory_space<vmem>>, %arg5: memref<1x384xf32, #tpu.memory_space<vmem>>, %arg6: memref<384x128xbf16, #tpu.memory_space<vmem>>, %arg7: memref<1x128xf32, #tpu.memory_space<vmem>>, %arg8: memref<16x128xbf16, #tpu.memory_space<vmem>>) attributes {dimension_semantics = [#tpu.dimension_semantics<parallel>], iteration_bounds = array<i64: 1>, scalar_prefetch = 0 : i64, scratch_operands = 0 : i64, tpu.core_type = #tpu.core_type<tc>, window_params = [{transform_indices = @transform_0, window_bounds = array<i64: 16, 128>}, {pipeline_mode = #tpu.pipeline_mode<synchronous>, transform_indices = @transform_1, window_bounds = array<i64: 128, 512>}, {pipeline_mode = #tpu.pipeline_mode<synchronous>, transform_indices = @transform_2, window_bounds = array<i64: 1, 512>}, {pipeline_mode = #tpu.pipeline_mode<synchronous>, transform_indices = @transform_3, window_bounds = array<i64: 512, 384>}, {pipeline_mode = #tpu.pipeline_mode<synchronous>, transform_indices = @transform_4, window_bounds = array<i64: 1, 384>}, {pipeline_mode = #tpu.pipeline_mode<synchronous>, transform_indices = @transform_5, window_bounds = array<i64: 384, 128>}, {pipeline_mode = #tpu.pipeline_mode<synchronous>, transform_indices = @transform_6, window_bounds = array<i64: 1, 128>}, {transform_indices = @transform_7, window_bounds = array<i64: 16, 128>}]} {
    %c0 = arith.constant 0 : index
    %c0_0 = arith.constant 0 : index
    %0 = vector.load %arg1[%c0, %c0_0] : memref<16x128xbf16, #tpu.memory_space<vmem>>, vector<16x128xbf16>
    %c0_1 = arith.constant 0 : index
    %c0_2 = arith.constant 0 : index
    %1 = vector.load %arg2[%c0_1, %c0_2] : memref<128x512xbf16, #tpu.memory_space<vmem>>, vector<128x512xbf16>
    %cst = arith.constant dense<0.000000e+00> : vector<16x512xf32>
    %2 = tpu.matmul %0, %1, %cst {dimension_numbers = #tpu.dot_dimension_numbers<[1], [0], [0], [1], [0, 0, 1, 1], [], []>} : vector<16x128xbf16>, vector<128x512xbf16>, vector<16x512xf32> -> vector<16x512xf32>
    %c0_3 = arith.constant 0 : index
    %c0_4 = arith.constant 0 : index
    %3 = vector.load %arg3[%c0_3, %c0_4] : memref<1x512xf32, #tpu.memory_space<vmem>>, vector<1x512xf32>
    %4 = vector.broadcast %3 : vector<1x512xf32> to vector<16x512xf32>
    %5 = arith.addf %2, %4 : vector<16x512xf32>
    %cst_5 = arith.constant 0.000000e+00 : f32
    %6 = vector.broadcast %cst_5 : f32 to vector<16x512xf32>
    %7 = arith.maximumf %5, %6 : vector<16x512xf32>
    %8 = arith.truncf %7 : vector<16x512xf32> to vector<16x512xbf16>
    %c0_6 = arith.constant 0 : index
    %c0_7 = arith.constant 0 : index
    %9 = vector.load %arg4[%c0_6, %c0_7] : memref<512x384xbf16, #tpu.memory_space<vmem>>, vector<512x384xbf16>
    %cst_8 = arith.constant dense<0.000000e+00> : vector<16x384xf32>
    %10 = tpu.matmul %8, %9, %cst_8 {dimension_numbers = #tpu.dot_dimension_numbers<[1], [0], [0], [1], [0, 0, 1, 1], [], []>} : vector<16x512xbf16>, vector<512x384xbf16>, vector<16x384xf32> -> vector<16x384xf32>
    %c0_9 = arith.constant 0 : index
    %c0_10 = arith.constant 0 : index
    %11 = vector.load %arg5[%c0_9, %c0_10] : memref<1x384xf32, #tpu.memory_space<vmem>>, vector<1x384xf32>
    %12 = vector.broadcast %11 : vector<1x384xf32> to vector<16x384xf32>
    %13 = arith.addf %10, %12 : vector<16x384xf32>
    %cst_11 = arith.constant 0.000000e+00 : f32
    %14 = vector.broadcast %cst_11 : f32 to vector<16x384xf32>
    %15 = arith.maximumf %13, %14 : vector<16x384xf32>
    %16 = arith.truncf %15 : vector<16x384xf32> to vector<16x384xbf16>
    %c0_12 = arith.constant 0 : index
    %c0_13 = arith.constant 0 : index
    %17 = vector.load %arg6[%c0_12, %c0_13] : memref<384x128xbf16, #tpu.memory_space<vmem>>, vector<384x128xbf16>
    %cst_14 = arith.constant dense<0.000000e+00> : vector<16x128xf32>
    %18 = tpu.matmul %16, %17, %cst_14 {dimension_numbers = #tpu.dot_dimension_numbers<[1], [0], [0], [1], [0, 0, 1, 1], [], []>} : vector<16x384xbf16>, vector<384x128xbf16>, vector<16x128xf32> -> vector<16x128xf32>
    %c0_15 = arith.constant 0 : index
    %c0_16 = arith.constant 0 : index
    %19 = vector.load %arg7[%c0_15, %c0_16] : memref<1x128xf32, #tpu.memory_space<vmem>>, vector<1x128xf32>
    %20 = vector.broadcast %19 : vector<1x128xf32> to vector<16x128xf32>
    %21 = arith.addf %18, %20 : vector<16x128xf32>
    %22 = arith.truncf %21 : vector<16x128xf32> to vector<16x128xbf16>
    %c0_17 = arith.constant 0 : index
    %c0_18 = arith.constant 0 : index
    %23 = vector.load %arg8[%c0_17, %c0_18] : memref<16x128xbf16, #tpu.memory_space<vmem>>, vector<16x128xbf16>
    tpu.vector_store %arg8[%c0_17, %c0_18], %22 {strides = array<i32>} : memref<16x128xbf16, #tpu.memory_space<vmem>>, vector<16x128xbf16>,
    return
  }
  func.func @transform_0(%arg0: i32) -> (i32, i32) {
    %c0_i32 = arith.constant 0 : i32
    %c0_i32_0 = arith.constant 0 : i32
    return %arg0, %c0_i32 : i32, i32
  }
  func.func @transform_1(%arg0: i32) -> (i32, i32) {
    %c0_i32 = arith.constant 0 : i32
    %c0_i32_0 = arith.constant 0 : i32
    %c0_i32_1 = arith.constant 0 : i32
    return %c0_i32, %c0_i32_0 : i32, i32
  }
  func.func @transform_2(%arg0: i32) -> (i32, i32) {
    %c0_i32 = arith.constant 0 : i32
    %c0_i32_0 = arith.constant 0 : i32
    %c0_i32_1 = arith.constant 0 : i32
    return %c0_i32, %c0_i32_0 : i32, i32
  }
  func.func @transform_3(%arg0: i32) -> (i32, i32) {
    %c0_i32 = arith.constant 0 : i32
    %c0_i32_0 = arith.constant 0 : i32
    %c0_i32_1 = arith.constant 0 : i32
    return %c0_i32, %c0_i32_0 : i32, i32
  }
  func.func @transform_4(%arg0: i32) -> (i32, i32) {
    %c0_i32 = arith.constant 0 : i32
    %c0_i32_0 = arith.constant 0 : i32
    %c0_i32_1 = arith.constant 0 : i32
    return %c0_i32, %c0_i32_0 : i32, i32
  }
  func.func @transform_5(%arg0: i32) -> (i32, i32) {
    %c0_i32 = arith.constant 0 : i32
    %c0_i32_0 = arith.constant 0 : i32
    %c0_i32_1 = arith.constant 0 : i32
    return %c0_i32, %c0_i32_0 : i32, i32
  }
  func.func @transform_6(%arg0: i32) -> (i32, i32) {
    %c0_i32 = arith.constant 0 : i32
    %c0_i32_0 = arith.constant 0 : i32
    %c0_i32_1 = arith.constant 0 : i32
    return %c0_i32, %c0_i32_0 : i32, i32
  }
  func.func @transform_7(%arg0: i32) -> (i32, i32) {
    %c0_i32 = arith.constant 0 : i32
    %c0_i32_0 = arith.constant 0 : i32
    return %arg0, %c0_i32 : i32, i32
  }
}

</mosaic_0001>

<bundles_post_ra>
// kernel: tpu_custom_call.1
= control target key start
LH: loop header
LB: loop body
LE: loop exit
PB: predicated region body
PF: predicated region fallthrough
CT: control target
= control target key end

     0   :  { %12 = vsyncpa [#allocation3], 0  ;;  %s2309_s0 = inlined_call_operand.hbm [shape: bf16[16,128], index: 0, kind: input, shape index: {}]   ;;  %s2310_s1 = inlined_call_operand.hbm [shape: bf16[128,512], index: 1, kind: input, shape index: {}]   ;;  %s2311_s2 = inlined_call_operand.vmem [shape: f32[1,512], index: 2, kind: input, shape index: {}]   ;;  %s2312_s3 = inlined_call_operand.hbm [shape: bf16[512,384], index: 3, kind: input, shape index: {}]   ;;  %s2313_s4 = inlined_call_operand.vmem [shape: f32[1,384], index: 4, kind: input, shape index: {}]   ;;  %s2314_s5 = inlined_call_operand.hbm [shape: bf16[384,128], index: 5, kind: input, shape index: {}]   ;;  %s2315_s6 = inlined_call_operand.vmem [shape: f32[1,128], index: 6, kind: input, shape index: {}]   ;;  %s2316_s7 = inlined_call_operand.hbm [shape: bf16[16,128], index: 7, kind: output, shape index: {}]  }
   0x1   :  { %13 = vsyncpa [#allocation6], 0 }
   0x2   :  { %14 = vsyncpa [#allocation9], 0 }
   0x3   :  { %15 = vsyncpa [#allocation4], 0  ;;  %s2146_s24 = smov [#allocation5]   ;;  %s2028_s28 = scalar_lea.hbm %s2310_s1, 4096 }
   0x4   :  { %s33_s25 = sshll.u32 %s2146_s24, 4  ;;  %p2029_p0 = scmp.ne.s32.totalorder %s2310_s1, %s2028_s28  ;;  %s34_s25 = int_to_ptr.vmem [resolvable:$true] %s33_s25 }
   0x5   :  { %p2032_p1 = scmp.lt.u32.totalorder %s2028_s28, %s2310_s1 }
   0x7   :  { %p2034_p2 = pnand %p2032_p1, %p2029_p0 }
   0x9   :  { %2037 = shalt.err (!%p2034_p2)
}
   0xa   :  { %s2038_s10 = scalar_lea.vmem %s34_s25, 4096  ;;  %p2043_p4 = scmp.lt.s32.totalorder %s34_s25, %s34_s25 }
   0xb   :  { %p2039_p3 = scmp.ne.s32.totalorder %s34_s25, %s2038_s10  ;;  %p2044_p5 = scmp.lt.s32.totalorder %s2038_s10, %s2038_s10 }
   0xd   :  { %p2045_p6 = por %p2044_p5, %p2043_p4 }
   0xf   :  { %p2046_p7 = pnand %p2045_p6, %p2039_p3 }
  0x11   :  { %2049 = shalt.err (!%p2046_p7)
}
  0x12   :  { %s2147_s11 = smov 256   ;;  %s2148_s12 = smov 16  }
  0x13   :  { %39 = dma.hbm_to_vmem [thread:$0]  %s2310_s1, 4096, %s34_s25, [#allocation6], %s2147_s11, %s2147_s11, %s2148_s12  }
  0x14   :  { %s2149_s15 = smov [#allocation2]   ;;  %s2050_s19 = scalar_lea.hbm %s2309_s0, 128 }
  0x15   :  { %s21_s16 = sshll.u32 %s2149_s15, 4  ;;  %p2051_p8 = scmp.ne.s32.totalorder %s2309_s0, %s2050_s19  ;;  %s22_s16 = int_to_ptr.vmem [resolvable:$true] %s21_s16 }
  0x16   :  { %p2054_p9 = scmp.lt.u32.totalorder %s2050_s19, %s2309_s0 }
  0x18   :  { %p2056_p10 = pnand %p2054_p9, %p2051_p8 }
  0x1a   :  { %2059 = shalt.err (!%p2056_p10)
}
  0x1b   :  { %s2060_s24 = scalar_lea.vmem %s22_s16, 128  ;;  %p2065_p12 = scmp.lt.s32.totalorder %s22_s16, %s22_s16 }
  0x1c   :  { %p2061_p11 = scmp.ne.s32.totalorder %s22_s16, %s2060_s24  ;;  %p2066_p13 = scmp.lt.s32.totalorder %s2060_s24, %s2060_s24 }
  0x1e   :  { %p2067_p0 = por %p2066_p13, %p2065_p12 }
  0x20   :  { %p2068_p1 = pnand %p2067_p0, %p2061_p11 }
  0x22   :  { %2071 = shalt.err (!%p2068_p1)
}
  0x23   :  { %s2150_s1 = smov 64   ;;  %s2151_s25 = smov 4  }
  0x24   :  { %27 = dma.hbm_to_vmem [thread:$0]  %s2309_s0, 128, %s22_s16, [#allocation3], %s2150_s1, %s2150_s1, %s2151_s25  }
  0x25   :  { %s2152_s28 = smov [#allocation7]   ;;  %s2072_s9 = scalar_lea.hbm %s2312_s3, 12288 }
  0x26   :  { %s47_s29 = sshll.u32 %s2152_s28, 4  ;;  %p2073_p2 = scmp.ne.s32.totalorder %s2312_s3, %s2072_s9  ;;  %s48_s29 = int_to_ptr.vmem [resolvable:$true] %s47_s29 }
  0x27   :  { %p2076_p3 = scmp.lt.u32.totalorder %s2072_s9, %s2312_s3 }
  0x29   :  { %p2078_p4 = pnand %p2076_p3, %p2073_p2 }
  0x2b   :  { %2081 = shalt.err (!%p2078_p4)
}
  0x2c   :  { %s2082_s14 = scalar_lea.vmem %s48_s29, 12288  ;;  %p2087_p6 = scmp.lt.s32.totalorder %s48_s29, %s48_s29 }
  0x2d   :  { %p2083_p5 = scmp.ne.s32.totalorder %s48_s29, %s2082_s14  ;;  %p2088_p7 = scmp.lt.s32.totalorder %s2082_s14, %s2082_s14 }
  0x2f   :  { %p2089_p8 = por %p2088_p7, %p2087_p6 }
  0x31   :  { %p2090_p9 = pnand %p2089_p8, %p2083_p5 }
  0x33   :  { %2093 = shalt.err (!%p2090_p9)
}
  0x34   :  { %s2153_s0 = smov 192   ;;  %s2154_s15 = smov 12  }
  0x35   :  { %53 = dma.hbm_to_vmem [thread:$0]  %s2312_s3, 12288, %s48_s29, [#allocation6], %s2153_s0, %s2153_s0, %s2154_s15  }
  0x36   :  { %s2155_s18 = smov [#allocation8]   ;;  %s2094_s22 = scalar_lea.hbm %s2314_s5, 3072 }
  0x37   :  { %s61_s19 = sshll.u32 %s2155_s18, 4  ;;  %p2095_p10 = scmp.ne.s32.totalorder %s2314_s5, %s2094_s22  ;;  %s62_s19 = int_to_ptr.vmem [resolvable:$true] %s61_s19 }
  0x38   :  { %p2098_p11 = scmp.lt.u32.totalorder %s2094_s22, %s2314_s5 }
  0x3a   :  { %p2100_p12 = pnand %p2098_p11, %p2095_p10 }
  0x3c   :  { %2103 = shalt.err (!%p2100_p12)
}
  0x3d   :  { %s2104_s28 = scalar_lea.vmem %s62_s19, 3072  ;;  %p2109_p0 = scmp.lt.s32.totalorder %s62_s19, %s62_s19 }
  0x3e   :  { %p2105_p13 = scmp.ne.s32.totalorder %s62_s19, %s2104_s28  ;;  %p2110_p1 = scmp.lt.s32.totalorder %s2104_s28, %s2104_s28 }
  0x40   :  { %p2111_p2 = por %p2110_p1, %p2109_p0 }
  0x42   :  { %p2112_p3 = pnand %p2111_p2, %p2105_p13 }
  0x44   :  { %2115 = shalt.err (!%p2112_p3)
}
  0x45   :  { %67 = dma.hbm_to_vmem [thread:$0]  %s2314_s5, 3072, %s62_s19, [#allocation9], %s2150_s1, %s2150_s1, %s2151_s25  }
  0x46   :  { %2138 = dma.done.wait [#allocation3], 128  }
  0x47   :  { %2139 = vsyncadd [#allocation3], 4294967168 }
  0x48   :  { %2140 = dma.done.wait [#allocation6], 16384  }
  0x49   :  { %2141 = vsyncadd [#allocation6], 4294950912 }
  0x4a   :  { %2142 = dma.done.wait [#allocation9], 3072  }
  0x4b   :  { %2143 = vsyncadd [#allocation9], 4294964224  ;;  %v2156_v0 = vmov 0   ;;  %v1827_v1 = vld [vmem:[#allocation5 + $0x4] ss:$16 sps:$4 sm:$0xff]   ;;  %v1853_v29 = vld [vmem:[#allocation2] sm:$0xff]  }
  0x4c   :  { %337 = vmatprep.mubr.bf16.mxu0 %v2156_v0  ;;  %380 = vmatprep.mubr.bf16.mxu1 %v2156_v0  ;;  %v1829_v2 = vld [vmem:[#allocation5] ss:$16 sps:$4 sm:$0xff]   ;;  %v1830_v3 = vld [vmem:[#allocation5 + $0x24] ss:$16 sps:$4 sm:$0xff]   ;;  %v1851_v9 = vld [vmem:[#allocation5 + $0xc] ss:$16 sps:$4 sm:$0xff]  }
  0x4d   :  { %305 = vmatprep.subr.bf16.mxu0 %v1827_v1  ;;  %v1832_v4 = vld [vmem:[#allocation5 + $0x20] ss:$16 sps:$4 sm:$0xff]   ;;  %v1833_v5 = vld [vmem:[#allocation5 + $0x44] ss:$16 sps:$4 sm:$0xff]   ;;  %v1854_v11 = vld [vmem:[#allocation5 + $0x8] ss:$16 sps:$4 sm:$0xff]   ;;  %348 = vmatprep.subr.bf16.mxu1 %v1851_v9 }
  0x4e   :  { %306 = vmatpush1.bf16.msra.mxu0 %v1829_v2  ;;  %v1835_v6 = vld [vmem:[#allocation5 + $0x40] ss:$16 sps:$4 sm:$0xff]   ;;  %v1836_v7 = vld [vmem:[#allocation5 + $0x64] ss:$16 sps:$4 sm:$0xff]   ;;  %v1855_v12 = vld [vmem:[#allocation5 + $0x2c] ss:$16 sps:$4 sm:$0xff]   ;;  %349 = vmatpush1.bf16.msra.mxu1 %v1854_v11 }
  0x4f   :  { %307 = vmatprep.subr.bf16.mxu0 %v1830_v3  ;;  %v1838_v8 = vld [vmem:[#allocation5 + $0x60] ss:$16 sps:$4 sm:$0xff]   ;;  %v1839_v10 = vld [vmem:[#allocation5 + $0x84] ss:$16 sps:$4 sm:$0xff]   ;;  %v1857_v13 = vld [vmem:[#allocation5 + $0x28] ss:$16 sps:$4 sm:$0xff]   ;;  %350 = vmatprep.subr.bf16.mxu1 %v1855_v12 }
  0x50   :  { %v1841_v14 = vld [vmem:[#allocation5 + $0x80] ss:$16 sps:$4 sm:$0xff]   ;;  %v1858_v15 = vld [vmem:[#allocation5 + $0x4c] ss:$16 sps:$4 sm:$0xff]   ;;  %v1842_v16 = vld [vmem:[#allocation5 + $0xa4] ss:$16 sps:$4 sm:$0xff]  }
  0x51   :  { %v1860_v17 = vld [vmem:[#allocation5 + $0x48] ss:$16 sps:$4 sm:$0xff]   ;;  %v1844_v18 = vld [vmem:[#allocation5 + $0xa0] ss:$16 sps:$4 sm:$0xff]   ;;  %v1861_v19 = vld [vmem:[#allocation5 + $0x6c] ss:$16 sps:$4 sm:$0xff]  }
  0x52   :  { %308 = vmatpush1.bf16.msra.mxu0 %v1832_v4  ;;  %351 = vmatpush1.bf16.msra.mxu1 %v1857_v13  ;;  %v1845_v20 = vld [vmem:[#allocation5 + $0xc4] ss:$16 sps:$4 sm:$0xff]   ;;  %v1863_v21 = vld [vmem:[#allocation5 + $0x68] ss:$16 sps:$4 sm:$0xff]   ;;  %v1847_v22 = vld [vmem:[#allocation5 + $0xc0] ss:$16 sps:$4 sm:$0xff]  }
  0x53   :  { %309 = vmatprep.subr.bf16.mxu0 %v1833_v5  ;;  %352 = vmatprep.subr.bf16.mxu1 %v1858_v15  ;;  %v1864_v23 = vld [vmem:[#allocation5 + $0x8c] ss:$16 sps:$4 sm:$0xff]   ;;  %v1848_v24 = vld [vmem:[#allocation5 + $0xe4] ss:$16 sps:$4 sm:$0xff]   ;;  %v1866_v25 = vld [vmem:[#allocation5 + $0x88] ss:$16 sps:$4 sm:$0xff]  }
  0x54   :  { %v1850_v26 = vld [vmem:[#allocation5 + $0xe0] ss:$16 sps:$4 sm:$0xff]   ;;  %v1867_v27 = vld [vmem:[#allocation5 + $0xac] ss:$16 sps:$4 sm:$0xff]   ;;  %v1869_v30 = vld [vmem:[#allocation5 + $0xa8] ss:$16 sps:$4 sm:$0xff]  }
  0x55   :  { %v1878_v28 = vld [vmem:[#allocation7 + $0x4] ss:$12 sps:$4 sm:$0xff]   ;;  %v1870_v31 = vld [vmem:[#allocation5 + $0xcc] ss:$16 sps:$4 sm:$0xff]   ;;  %v1872_v34 = vld [vmem:[#allocation5 + $0xc8] ss:$16 sps:$4 sm:$0xff]  }
  0x56   :  { %310 = vmatpush1.bf16.msra.mxu0 %v1835_v6  ;;  %353 = vmatpush1.bf16.msra.mxu1 %v1860_v17  ;;  %v1876_v32 = vld [vmem:[#allocation7] ss:$12 sps:$4 sm:$0xff]   ;;  %v1881_v33 = vld [vmem:[#allocation7 + $0x1c] ss:$12 sps:$4 sm:$0xff]   ;;  %v1879_v36 = vld [vmem:[#allocation7 + $0x18] ss:$12 sps:$4 sm:$0xff]  }
  0x57   :  { %311 = vmatprep.subr.bf16.mxu0 %v1836_v7  ;;  %354 = vmatprep.subr.bf16.mxu1 %v1861_v19  ;;  %v1873_v35 = vld [vmem:[#allocation5 + $0xec] ss:$16 sps:$4 sm:$0xff]   ;;  %v1884_v37 = vld [vmem:[#allocation7 + $0x34] ss:$12 sps:$4 sm:$0xff]   ;;  %v1875_v38 = vld [vmem:[#allocation5 + $0xe8] ss:$16 sps:$4 sm:$0xff]  }
  0x58   :  { %v1882_v39 = vld [vmem:[#allocation7 + $0x30] ss:$12 sps:$4 sm:$0xff]   ;;  %v1903_v40 = vld [vmem:[#allocation7 + $0xc8] ss:$12 sps:$4 sm:$0xff]   ;;  %v1887_v41 = vld [vmem:[#allocation7 + $0x4c] ss:$12 sps:$4 sm:$0xff]  }
  0x59   :  { %v1885_v42 = vld [vmem:[#allocation7 + $0x48] ss:$12 sps:$4 sm:$0xff]   ;;  %v1908_v44 = vld [vmem:[#allocation7 + $0xe0] ss:$12 sps:$4 sm:$0xff]   ;;  %v1890_v45 = vld [vmem:[#allocation7 + $0x64] ss:$12 sps:$4 sm:$0xff]  }
  0x5a   :  { %312 = vmatpush1.bf16.msra.mxu0 %v1838_v8  ;;  %355 = vmatpush1.bf16.msra.mxu1 %v1863_v21  ;;  %v1904_v43 = vld [vmem:[#allocation7 + $0x8] ss:$12 sps:$4 sm:$0xff]   ;;  %v1909_v46 = vld [vmem:[#allocation7 + $0x20] ss:$12 sps:$4 sm:$0xff]   ;;  %v1913_v48 = vld [vmem:[#allocation7 + $0xf8] ss:$12 sps:$4 sm:$0xff]  }
  0x5b   :  { %313 = vmatprep.subr.bf16.mxu0 %v1839_v10  ;;  %356 = vmatprep.subr.bf16.mxu1 %v1864_v23  ;;  %v1888_v47 = vld [vmem:[#allocation7 + $0x60] ss:$12 sps:$4 sm:$0xff]   ;;  %v1893_v49 = vld [vmem:[#allocation7 + $0x7c] ss:$12 sps:$4 sm:$0xff]   ;;  %v1891_v50 = vld [vmem:[#allocation7 + $0x78] ss:$12 sps:$4 sm:$0xff]  }
  0x5c   :  { %v1896_v51 = vld [vmem:[#allocation7 + $0x94] ss:$12 sps:$4 sm:$0xff]   ;;  %v1914_v52 = vld [vmem:[#allocation7 + $0x38] ss:$12 sps:$4 sm:$0xff]   ;;  %v1918_v53 = vld [vmem:[#allocation7 + $0x110] ss:$12 sps:$4 sm:$0xff]  }
  0x5d   :  { %v1919_v54 = vld [vmem:[#allocation7 + $0x50] ss:$12 sps:$4 sm:$0xff]   ;;  %v1923_v56 = vld [vmem:[#allocation7 + $0x128] ss:$12 sps:$4 sm:$0xff]   ;;  %v1899_v57 = vld [vmem:[#allocation7 + $0xac] ss:$12 sps:$4 sm:$0xff]  }
  0x5e   :  { %314 = vmatpush1.bf16.msra.mxu0 %v1841_v14  ;;  %357 = vmatpush1.bf16.msra.mxu1 %v1866_v25  ;;  %v1894_v55 = vld [vmem:[#allocation7 + $0x90] ss:$12 sps:$4 sm:$0xff]   ;;  %v1924_v58 = vld [vmem:[#allocation7 + $0x68] ss:$12 sps:$4 sm:$0xff]   ;;  %v1928_v60 = vld [vmem:[#allocation7 + $0x140] ss:$12 sps:$4 sm:$0xff]  }
  0x5f   :  { %315 = vmatprep.subr.bf16.mxu0 %v1842_v16  ;;  %358 = vmatprep.subr.bf16.mxu1 %v1867_v27  ;;  %v1897_v59 = vld [vmem:[#allocation7 + $0xa8] ss:$12 sps:$4 sm:$0xff]   ;;  %v1902_v61 = vld [vmem:[#allocation7 + $0xc4] ss:$12 sps:$4 sm:$0xff]   ;;  %v1929_v62 = vld [vmem:[#allocation7 + $0x80] ss:$12 sps:$4 sm:$0xff]  }
  0x60   :  { %v1900_v63 = vld [vmem:[#allocation7 + $0xc0] ss:$12 sps:$4 sm:$0xff]   ;;  %v1907_v0 = vld [vmem:[#allocation7 + $0xdc] ss:$12 sps:$4 sm:$0xff]   ;;  %v1905_v1 = vld [vmem:[#allocation7 + $0xd8] ss:$12 sps:$4 sm:$0xff]  }
  0x61   :  { %v1912_v2 = vld [vmem:[#allocation7 + $0xf4] ss:$12 sps:$4 sm:$0xff]   ;;  %v1910_v3 = vld [vmem:[#allocation7 + $0xf0] ss:$12 sps:$4 sm:$0xff]   ;;  %v1917_v4 = vld [vmem:[#allocation7 + $0x10c] ss:$12 sps:$4 sm:$0xff]  }
  0x62   :  { %316 = vmatpush1.bf16.msra.mxu0 %v1844_v18  ;;  %359 = vmatpush1.bf16.msra.mxu1 %v1869_v30  ;;  %v1915_v5 = vld [vmem:[#allocation7 + $0x108] ss:$12 sps:$4 sm:$0xff]   ;;  %v1922_v6 = vld [vmem:[#allocation7 + $0x124] ss:$12 sps:$4 sm:$0xff]   ;;  %v1920_v7 = vld [vmem:[#allocation7 + $0x120] ss:$12 sps:$4 sm:$0xff]  }
  0x63   :  { %317 = vmatprep.subr.bf16.mxu0 %v1845_v20  ;;  %360 = vmatprep.subr.bf16.mxu1 %v1870_v31  ;;  %v1927_v8 = vld [vmem:[#allocation7 + $0x13c] ss:$12 sps:$4 sm:$0xff]   ;;  %v1925_v9 = vld [vmem:[#allocation7 + $0x138] ss:$12 sps:$4 sm:$0xff]   ;;  %v1932_v10 = vld [vmem:[#allocation7 + $0x154] ss:$12 sps:$4 sm:$0xff]   ;;  %v119_v20 = vlaneseq }
  0x64   :  { %v1933_v11 = vld [vmem:[#allocation7 + $0x158] ss:$12 sps:$4 sm:$0xff]   ;;  %v1930_v12 = vld [vmem:[#allocation7 + $0x150] ss:$12 sps:$4 sm:$0xff]   ;;  %v1935_v16 = vld [vmem:[#allocation7 + $0x168] ss:$12 sps:$4 sm:$0xff]  }
  0x65   :  { %v1934_v13 = vld [vmem:[#allocation7 + $0x98] ss:$12 sps:$4 sm:$0xff]   ;;  %v1938_v15 = vld [vmem:[#allocation7 + $0x170] ss:$12 sps:$4 sm:$0xff]   ;;  %v1943_v19 = vld [vmem:[#allocation7 + $0x248] ss:$12 sps:$4 sm:$0xff]  }
  0x66   :  { %318 = vmatpush1.bf16.msra.mxu0 %v1847_v22  ;;  %361 = vmatpush1.bf16.msra.mxu1 %v1872_v34  ;;  %v1937_v14 = vld [vmem:[#allocation7 + $0x16c] ss:$12 sps:$4 sm:$0xff]   ;;  %v1939_v17 = vld [vmem:[#allocation7 + $0xb0] ss:$12 sps:$4 sm:$0xff]   ;;  %v2254_v21 = vshrl.u32 %v119_v20, 7  ;;  %vm2158_vm0 = vmmov 0  }
  0x67   :  { %319 = vmatprep.subr.bf16.mxu0 %v1848_v24  ;;  %362 = vmatprep.subr.bf16.mxu1 %v1873_v35  ;;  %v1942_v18 = vld [vmem:[#allocation7 + $0x184] ss:$12 sps:$4 sm:$0xff]   ;;  %v117_v23 = vld [vmem:[%s2311_s2] sm:$0xf]  ;;  %s2159_s10 = smov [#allocation10]  }
  0x68   :  { %v121_v22 = vsub.s32 0, %v2254_v21  ;;  %v125_v24 = vsub.s32 1, %v2254_v21  ;;  %v129_v35 = vsub.s32 2, %v2254_v21  ;;  %v1974_v20 = vld [vmem:[#allocation7 + $0x218] ss:$12 sps:$4 sm:$0xff]   ;;  %s1533_s11 = sshll.u32 %s2159_s10, 4  ;;  %s1534_s11 = int_to_ptr.vmem [resolvable:$true] %s1533_s11 }
  0x69   :  { %s2116_s12 = scalar_lea.vmem %s1534_s11, 128  ;;  %p2121_p5 = scmp.lt.s32.totalorder %s1534_s11, %s1534_s11 }
  0x6a   :  { %320 = vmatpush1.bf16.msra.mxu0 %v1850_v26  ;;  %363 = vmatpush1.bf16.msra.mxu1 %v1875_v38  ;;  %v122_v25 = vrot.slane %v117_v23, %v121_v22  ;;  %v126_v26 = vrot.slane %v117_v23, %v125_v24  ;;  %v133_v38 = vsub.s32 3, %v2254_v21  ;;  %v2021_v21 = vld [vmem:[#allocation8 + $0x88] sm:$0xff]   ;;  %p2117_p4 = scmp.ne.s32.totalorder %s1534_s11, %s2116_s12  ;;  %p2122_p6 = scmp.lt.s32.totalorder %s2116_s12, %s2116_s12 }
  0x6b   :  { %1060 = vmatprep.subr.bf16.mxu0 %v1878_v28  ;;  %1710 = vmatprep.subr.bf16.mxu1 %v1903_v40 }
  0x6c   :  { %p2123_p7 = por %p2122_p6, %p2121_p5 }
  0x6d   :  { %338 = vmatmul.mubr.bf16.vlgmr.msra.gmra.mrb[0].mxu0 %v1853_v29  ;;  %381 = vmatmul.mubr.bf16.vlgmr.msra.gmra.mrb[0].mxu1 %v1853_v29 }
  0x6e   :  { %1061 = vmatpush1.bf16.msra.mxu0 %v1876_v32  ;;  %1711 = vmatpush3.bf16.msra.mxu1 %v1904_v43  ;;  %v1940_v43 = vld [vmem:[#allocation7 + $0x180] ss:$12 sps:$4 sm:$0xff]   ;;  %p2124_p8 = pnand %p2123_p7, %p2117_p4 }
  0x6f   :  { %1062 = vmatprep.subr.bf16.mxu0 %v1881_v33  ;;  %1712 = vmatprep.subr.bf16.mxu1 %v1908_v44  ;;  %v1944_v44 = vld [vmem:[#allocation7 + $0x188] ss:$12 sps:$4 sm:$0xff]  }
  0x72   :  { %1063 = vmatpush1.bf16.msra.mxu0 %v1879_v36  ;;  %1713 = vmatpush3.bf16.msra.mxu1 %v1909_v46  ;;  %v1947_v46 = vld [vmem:[#allocation7 + $0x19c] ss:$12 sps:$4 sm:$0xff]  }
  0x73   :  { %1064 = vmatprep.subr.bf16.mxu0 %v1884_v37  ;;  %1714 = vmatprep.subr.bf16.mxu1 %v1913_v48  ;;  %v134_v48 = vrot.slane %v117_v23, %v133_v38  ;;  %v1992_v38 = vld [vmem:[#allocation7 + $0x2a0] ss:$12 sps:$4 sm:$0xff]  }
  0x76   :  { %1065 = vmatpush1.bf16.msra.mxu0 %v1882_v39  ;;  %1715 = vmatpush3.bf16.msra.mxu1 %v1914_v52 }
  0x77   :  { %1066 = vmatprep.subr.bf16.mxu0 %v1887_v41  ;;  %1716 = vmatprep.subr.bf16.mxu1 %v1918_v53 }
  0x7a   :  { %1067 = vmatpush1.bf16.msra.mxu0 %v1885_v42  ;;  %1717 = vmatpush3.bf16.msra.mxu1 %v1919_v54  ;;  %v1952_v54 = vld [vmem:[#allocation7 + $0x1b4] ss:$12 sps:$4 sm:$0xff]  }
  0x7b   :  { %1068 = vmatprep.subr.bf16.mxu0 %v1890_v45  ;;  %1718 = vmatprep.subr.bf16.mxu1 %v1923_v56  ;;  %v130_v45 = vrot.slane %v117_v23, %v129_v35  ;;  %v1977_v23 = vld [vmem:[#allocation7 + $0x22c] ss:$12 sps:$4 sm:$0xff]  }
  0x7e   :  { %1069 = vmatpush1.bf16.msra.mxu0 %v1888_v47  ;;  %1719 = vmatpush3.bf16.msra.mxu1 %v1924_v58  ;;  %v1948_v47 = vld [vmem:[#allocation7 + $0x260] ss:$12 sps:$4 sm:$0xff]  }
  0x7f   :  { %1070 = vmatprep.subr.bf16.mxu0 %v1893_v49  ;;  %1720 = vmatprep.subr.bf16.mxu1 %v1928_v60 }
  0x82   :  { %1071 = vmatpush1.bf16.msra.mxu0 %v1891_v50  ;;  %1721 = vmatpush3.bf16.msra.mxu1 %v1929_v62  ;;  %v1945_v50 = vld [vmem:[#allocation7 + $0x198] ss:$12 sps:$4 sm:$0xff]  }
  0x83   :  { %1072 = vmatprep.subr.bf16.mxu0 %v1896_v51  ;;  %1722 = vmatprep.subr.bf16.mxu1 %v1933_v11  ;;  %v1949_v51 = vld [vmem:[#allocation7 + $0x1a0] ss:$12 sps:$4 sm:$0xff]  }
  0x84   :  { %v1960_v11 = vld [vmem:[#allocation7 + $0x1e0] ss:$12 sps:$4 sm:$0xff]  }
  0x86   :  { %1073 = vmatpush1.bf16.msra.mxu0 %v1894_v55  ;;  %1723 = vmatpush3.bf16.msra.mxu1 %v1934_v13  ;;  %v1953_v55 = vld [vmem:[#allocation7 + $0x278] ss:$12 sps:$4 sm:$0xff]   ;;  %v1967_v13 = vld [vmem:[#allocation7 + $0x1fc] ss:$12 sps:$4 sm:$0xff]  }
  0x87   :  { %1074 = vmatprep.subr.bf16.mxu0 %v1899_v57  ;;  %1724 = vmatprep.subr.bf16.mxu1 %v1938_v15  ;;  %v1965_v15 = vld [vmem:[#allocation7 + $0x1f8] ss:$12 sps:$4 sm:$0xff]  }
  0x8a   :  { %1075 = vmatpush1.bf16.msra.mxu0 %v1897_v59  ;;  %1725 = vmatpush3.bf16.msra.mxu1 %v1939_v17  ;;  %v1972_v17 = vld [vmem:[#allocation7 + $0x214] ss:$12 sps:$4 sm:$0xff]  }
  0x8b   :  { %1076 = vmatprep.subr.bf16.mxu0 %v1902_v61  ;;  %1732 = vmatprep.subr.bf16.mxu1 %v1943_v19  ;;  %v1970_v19 = vld [vmem:[#allocation7 + $0x210] ss:$12 sps:$4 sm:$0xff]  }
  0x8e   :  { %1077 = vmatpush1.bf16.msra.mxu0 %v1900_v63  ;;  %v1950_v63 = vld [vmem:[#allocation7 + $0x1b0] ss:$12 sps:$4 sm:$0xff]  }
  0x8f   :  { %1078 = vmatprep.subr.bf16.mxu0 %v1907_v0  ;;  %v1954_v0 = vld [vmem:[#allocation7 + $0x1b8] ss:$12 sps:$4 sm:$0xff]  }
  0x92   :  { %1079 = vmatpush1.bf16.msra.mxu0 %v1905_v1 }
  0x93   :  { %1080 = vmatprep.subr.bf16.mxu0 %v1912_v2  ;;  %v1957_v2 = vld [vmem:[#allocation7 + $0x1cc] ss:$12 sps:$4 sm:$0xff]  }
  0x96   :  { %1081 = vmatpush1.bf16.msra.mxu0 %v1910_v3  ;;  %v1958_v3 = vld [vmem:[#allocation7 + $0x290] ss:$12 sps:$4 sm:$0xff]  }
  0x97   :  { %1082 = vmatprep.subr.bf16.mxu0 %v1917_v4 }
  0x9a   :  { %1083 = vmatpush1.bf16.msra.mxu0 %v1915_v5 }
  0x9b   :  { %1084 = vmatprep.subr.bf16.mxu0 %v1922_v6 }
  0x9e   :  { %1085 = vmatpush1.bf16.msra.mxu0 %v1920_v7  ;;  %v1955_v7 = vld [vmem:[#allocation7 + $0x1c8] ss:$12 sps:$4 sm:$0xff]  }
  0x9f   :  { %1086 = vmatprep.subr.bf16.mxu0 %v1927_v8  ;;  %v1959_v8 = vld [vmem:[#allocation7 + $0x1d0] ss:$12 sps:$4 sm:$0xff]  }
  0xa2   :  { %1087 = vmatpush1.bf16.msra.mxu0 %v1925_v9  ;;  %v1962_v9 = vld [vmem:[#allocation7 + $0x1e4] ss:$12 sps:$4 sm:$0xff]  }
  0xa3   :  { %1088 = vmatprep.subr.bf16.mxu0 %v1932_v10  ;;  %v1963_v10 = vld [vmem:[#allocation7 + $0x2a8] ss:$12 sps:$4 sm:$0xff]  }
  0xa6   :  { %1089 = vmatpush1.bf16.msra.mxu0 %v1930_v12  ;;  %v1964_v12 = vld [vmem:[#allocation7 + $0x1e8] ss:$12 sps:$4 sm:$0xff]  }
  0xa7   :  { %1090 = vmatprep.subr.bf16.mxu0 %v1937_v14  ;;  %v1968_v14 = vld [vmem:[#allocation7 + $0x2c0] ss:$12 sps:$4 sm:$0xff]  }
  0xaa   :  { %1091 = vmatpush1.bf16.msra.mxu0 %v1935_v16  ;;  %v1969_v16 = vld [vmem:[#allocation7 + $0x200] ss:$12 sps:$4 sm:$0xff]  }
  0xab   :  { %1103 = vmatprep.subr.bf16.mxu0 %v1942_v18  ;;  %v1973_v18 = vld [vmem:[#allocation7 + $0x2d8] ss:$12 sps:$4 sm:$0xff]  }
 0x140   :  { %v339_v27 = vpop.f32.mrb[0].mxu0  ;;  %v382_v49 = vpop.f32.mrb[0].mxu1 }
 0x141   :  { %v340_v28 = vadd.f32 %v339_v27, %v122_v25  ;;  %v341_v29 = vpop.f32.mrb[1].mxu0  ;;  %v383_v52 = vadd.f32 %v382_v49, %v130_v45  ;;  %v384_v53 = vpop.f32.mrb[1].mxu1  ;;  %v1979_v27 = vld [vmem:[#allocation7 + $0x230] ss:$12 sps:$4 sm:$0xff]  }
 0x142   :  { %v342_v30 = vadd.f32 %v341_v29, %v126_v26  ;;  %v343_v31 = vpop.f32.mrb[2].mxu0  ;;  %v385_v56 = vadd.f32 %v384_v53, %v134_v48  ;;  %v386_v57 = vpop.f32.mrb[2].mxu1  ;;  %v1980_v29 = vld [vmem:[#allocation7 + $0x240] ss:$12 sps:$4 sm:$0xff]   ;;  %v2008_v49 = vld [vmem:[#allocation8 + $0x50] sm:$0xff]  }
 0x143   :  { %v344_v32 = vadd.f32 %v343_v31, %v122_v25  ;;  %v345_v33 = vpop.f32.mrb[3].mxu0  ;;  %v391_v36 = vmax.f32 %v340_v28, 0.0  ;;  %v393_v58 = vmax.f32 %v383_v52, 0.0  ;;  %v387_v59 = vadd.f32 %v386_v57, %v130_v45  ;;  %v388_v60 = vpop.f32.mrb[3].mxu1  ;;  %v1978_v25 = vld [vmem:[#allocation7 + $0x2f0] ss:$12 sps:$4 sm:$0xff]  }
 0x144   :  { %v346_v34 = vadd.f32 %v345_v33, %v126_v26  ;;  %v392_v39 = vmax.f32 %v342_v30, 0.0  ;;  %v394_v61 = vmax.f32 %v385_v56, 0.0  ;;  %v389_v62 = vadd.f32 %v388_v60, %v134_v48  ;;  %v1975_v26 = vld [vmem:[#allocation7 + $0x228] ss:$12 sps:$4 sm:$0xff]   ;;  %v1982_v28 = vld [vmem:[#allocation7 + $0x244] ss:$12 sps:$4 sm:$0xff]  }
 0x145   :  { %v395_v37 = vmax.f32 %v344_v32, 0.0  ;;  %v397_v1 = vmax.f32 %v387_v59, 0.0  ;;  %v1985_v30 = vld [vmem:[#allocation7 + $0x25c] ss:$12 sps:$4 sm:$0xff]   ;;  %v1983_v31 = vld [vmem:[#allocation7 + $0x258] ss:$12 sps:$4 sm:$0xff]  }
 0x146   :  { %v396_v40 = vmax.f32 %v346_v34, 0.0  ;;  %v398_v4 = vmax.f32 %v389_v62, 0.0  ;;  %v1988_v32 = vld [vmem:[#allocation7 + $0x274] ss:$12 sps:$4 sm:$0xff]   ;;  %v1986_v33 = vld [vmem:[#allocation7 + $0x270] ss:$12 sps:$4 sm:$0xff]  }
 0x147   :  { %v399_v41 = vpack.c.bf16 %v395_v37, %v391_v36  ;;  %v2269_v5 = vpack.c.bf16 %v397_v1, %v393_v58  ;;  %v1991_v34 = vld [vmem:[#allocation7 + $0x28c] ss:$12 sps:$4 sm:$0xff]   ;;  %v1989_v36 = vld [vmem:[#allocation7 + $0x288] ss:$12 sps:$4 sm:$0xff]   ;;  %v1994_v37 = vld [vmem:[#allocation7 + $0x2a4] ss:$12 sps:$4 sm:$0xff]  }
 0x148   :  { %v400_v42 = vpack.c.bf16 %v396_v40, %v392_v39  ;;  %v402_v6 = vpack.c.bf16 %v398_v4, %v394_v61  ;;  %v1997_v39 = vld [vmem:[#allocation7 + $0x2bc] ss:$12 sps:$4 sm:$0xff]   ;;  %v1995_v40 = vld [vmem:[#allocation7 + $0x2b8] ss:$12 sps:$4 sm:$0xff]   ;;  %v2016_v57 = vld [vmem:[#allocation8 + $0x70] sm:$0xff]   ;;  %v2157_v61 = vmov 0.0  }
 0x149   :  { %v2004_v45 = vld [vmem:[#allocation8 + $0x40] sm:$0xff]   ;;  %v2007_v48 = vld [vmem:[#allocation8 + $0x8] sm:$0xff]   ;;  %v2011_v52 = vld [vmem:[#allocation8 + $0x18] sm:$0xff]  }
 0x14a   :  { %1092 = vmatprep.mubr.bf16.mxu0 %v400_v42  ;;  %1178 = vmatprep.mubr.bf16.mxu1 %v400_v42  ;;  %v1998_v42 = vld [vmem:[#allocation7 + $0x2d0] ss:$12 sps:$4 sm:$0xff]   ;;  %v2012_v53 = vld [vmem:[#allocation8 + $0x60] sm:$0xff]   ;;  %v2015_v56 = vld [vmem:[#allocation8 + $0x28] sm:$0xff]  }
 0x14b   :  { %1093 = vmatmul.mubr.bf16.vlgmr.msra.gmra.mrb[4].mxu0 %v399_v41  ;;  %1179 = vmatmul.mubr.bf16.vlgmr.msra.gmra.mrb[4].mxu1 %v399_v41  ;;  %v2000_v41 = vld [vmem:[#allocation7 + $0x2d4] ss:$12 sps:$4 sm:$0xff]   ;;  %v2018_v59 = vld [vmem:[#allocation8 + $0x78] sm:$0xff]  }
 0x14c   :  { %1104 = vmatpush1.bf16.msra.mxu0 %v1940_v43  ;;  %1733 = vmatpush3.bf16.msra.mxu1 %v1944_v44  ;;  %v2003_v43 = vld [vmem:[#allocation7 + $0x2ec] ss:$12 sps:$4 sm:$0xff]   ;;  %v2001_v44 = vld [vmem:[#allocation7 + $0x2e8] ss:$12 sps:$4 sm:$0xff]  }
 0x14d   :  { %1105 = vmatprep.subr.bf16.mxu0 %v1947_v46  ;;  %1734 = vmatprep.subr.bf16.mxu1 %v1948_v47  ;;  %v2005_v46 = vld [vmem:[#allocation8] sm:$0xff]   ;;  %v2006_v47 = vld [vmem:[#allocation8 + $0x48] sm:$0xff]   ;;  %v2017_v58 = vld [vmem:[#allocation8 + $0x30] sm:$0xff]  }
 0x14e   :  { %1219 = vmatprep.mubr.bf16.mxu1 %v402_v6  ;;  %1135 = vmatprep.mubr.bf16.mxu0 %v402_v6  ;;  %v2019_v60 = vld [vmem:[#allocation8 + $0x38] sm:$0xff]  }
 0x14f   :  { %v531_v4 = vld [vmem:[%s2313_s4] sm:$0x7] }
 0x150   :  { %1106 = vmatpush1.bf16.msra.mxu0 %v1945_v50  ;;  %1735 = vmatpush3.bf16.msra.mxu1 %v1949_v51  ;;  %v2009_v50 = vld [vmem:[#allocation8 + $0x10] sm:$0xff]   ;;  %v2010_v51 = vld [vmem:[#allocation8 + $0x58] sm:$0xff]  }
 0x151   :  { %1107 = vmatprep.subr.bf16.mxu0 %v1952_v54  ;;  %1736 = vmatprep.subr.bf16.mxu1 %v1953_v55  ;;  %v2013_v54 = vld [vmem:[#allocation8 + $0x20] sm:$0xff]   ;;  %v2014_v55 = vld [vmem:[#allocation8 + $0x68] sm:$0xff]  }
 0x154   :  { %1108 = vmatpush1.bf16.msra.mxu0 %v1950_v63  ;;  %1737 = vmatpush3.bf16.msra.mxu1 %v1954_v0 }
 0x155   :  { %1109 = vmatprep.subr.bf16.mxu0 %v1957_v2  ;;  %1738 = vmatprep.subr.bf16.mxu1 %v1958_v3 }
 0x158   :  { %1110 = vmatpush1.bf16.msra.mxu0 %v1955_v7  ;;  %1739 = vmatpush3.bf16.msra.mxu1 %v1959_v8 }
 0x159   :  { %1111 = vmatprep.subr.bf16.mxu0 %v1962_v9  ;;  %1740 = vmatprep.subr.bf16.mxu1 %v1963_v10 }
 0x15c   :  { %1112 = vmatpush1.bf16.msra.mxu0 %v1960_v11  ;;  %1741 = vmatpush3.bf16.msra.mxu1 %v1964_v12 }
 0x15d   :  { %1113 = vmatprep.subr.bf16.mxu0 %v1967_v13  ;;  %1742 = vmatprep.subr.bf16.mxu1 %v1968_v14 }
 0x160   :  { %1114 = vmatpush1.bf16.msra.mxu0 %v1965_v15  ;;  %1743 = vmatpush3.bf16.msra.mxu1 %v1969_v16 }
 0x161   :  { %1115 = vmatprep.subr.bf16.mxu0 %v1972_v17  ;;  %1744 = vmatprep.subr.bf16.mxu1 %v1973_v18 }
 0x164   :  { %1116 = vmatpush1.bf16.msra.mxu0 %v1970_v19  ;;  %1745 = vmatpush3.bf16.msra.mxu1 %v1974_v20  ;;  %v536_v19 = vrot.slane %v531_v4, %v121_v22  ;;  %v540_v20 = vrot.slane %v531_v4, %v125_v24  ;;  %v2022_v22 = vld [vmem:[#allocation8 + $0x90] sm:$0xff]   ;;  %v2023_v24 = vld [vmem:[#allocation8 + $0x98] sm:$0xff]  }
 0x165   :  { %1117 = vmatprep.subr.bf16.mxu0 %v1977_v23  ;;  %1746 = vmatprep.subr.bf16.mxu1 %v1978_v25 }
 0x168   :  { %1118 = vmatpush1.bf16.msra.mxu0 %v1975_v26  ;;  %1747 = vmatpush3.bf16.msra.mxu1 %v1979_v27 }
 0x169   :  { %1119 = vmatprep.subr.bf16.mxu0 %v1982_v28  ;;  %1754 = vmatprep.subr.bf16.mxu1 %v2004_v45 }
 0x16b   :  { %1220 = vmatmul.mubr.bf16.vlgmr.msra.gmra.mrb[8].mxu1 %v2269_v5 }
 0x16c   :  { %1120 = vmatpush1.bf16.msra.mxu0 %v1980_v29  ;;  %1755 = vmatpush3.bf16.msra.mxu1 %v2005_v46 }
 0x16d   :  { %1121 = vmatprep.subr.bf16.mxu0 %v1985_v30  ;;  %1756 = vmatprep.subr.bf16.mxu1 %v2006_v47 }
 0x170   :  { %1122 = vmatpush1.bf16.msra.mxu0 %v1983_v31  ;;  %1757 = vmatpush3.bf16.msra.mxu1 %v2007_v48 }
 0x171   :  { %1123 = vmatprep.subr.bf16.mxu0 %v1988_v32  ;;  %1758 = vmatprep.subr.bf16.mxu1 %v2008_v49  ;;  %v1676_v49 = vld [vmem:[%s2315_s6] ss:$0 sm:$0xff] }
 0x174   :  { %1124 = vmatpush1.bf16.msra.mxu0 %v1986_v33  ;;  %1759 = vmatpush3.bf16.msra.mxu1 %v2009_v50 }
 0x175   :  { %1125 = vmatprep.subr.bf16.mxu0 %v1991_v34  ;;  %1760 = vmatprep.subr.bf16.mxu1 %v2010_v51 }
 0x178   :  { %1126 = vmatpush1.bf16.msra.mxu0 %v1989_v36  ;;  %1761 = vmatpush3.bf16.msra.mxu1 %v2011_v52 }
 0x179   :  { %1127 = vmatprep.subr.bf16.mxu0 %v1994_v37  ;;  %1762 = vmatprep.subr.bf16.mxu1 %v2012_v53 }
 0x17c   :  { %1128 = vmatpush1.bf16.msra.mxu0 %v1992_v38  ;;  %1763 = vmatpush3.bf16.msra.mxu1 %v2013_v54  ;;  %v2020_v38 = vld [vmem:[#allocation8 + $0x80] sm:$0xff]  }
 0x17d   :  { %1129 = vmatprep.subr.bf16.mxu0 %v1997_v39  ;;  %1764 = vmatprep.subr.bf16.mxu1 %v2014_v55  ;;  %v2024_v39 = vld [vmem:[#allocation8 + $0xa0] sm:$0xff]  }
 0x180   :  { %1130 = vmatpush1.bf16.msra.mxu0 %v1995_v40  ;;  %1765 = vmatpush3.bf16.msra.mxu1 %v2015_v56  ;;  %v2025_v40 = vld [vmem:[#allocation8 + $0xa8] sm:$0xff]  }
 0x181   :  { %1131 = vmatprep.subr.bf16.mxu0 %v2000_v41  ;;  %1766 = vmatprep.subr.bf16.mxu1 %v2016_v57  ;;  %v2026_v41 = vld [vmem:[#allocation8 + $0xb0] sm:$0xff]  }
 0x184   :  { %1132 = vmatpush1.bf16.msra.mxu0 %v1998_v42  ;;  %1767 = vmatpush3.bf16.msra.mxu1 %v2017_v58  ;;  %v2027_v42 = vld [vmem:[#allocation8 + $0xb8] sm:$0xff]  }
 0x185   :  { %1133 = vmatprep.subr.bf16.mxu0 %v2003_v43  ;;  %1768 = vmatprep.subr.bf16.mxu1 %v2018_v59 }
 0x188   :  { %1134 = vmatpush1.bf16.msra.mxu0 %v2001_v44  ;;  %1769 = vmatpush3.bf16.msra.mxu1 %v2019_v60 }
 0x189   :  { %1785 = vmatprep.subr.bf16.mxu1 %v2157_v61 }
 0x18b   :  { %1136 = vmatmul.mubr.bf16.vlgmr.msra.gmra.mrb[4].mxu0 %v2269_v5  ;;  %v544_v5 = vrot.slane %v531_v4, %v129_v35 }
 0x21e   :  { %v1726_v62 = vpop.f32.mrb[4].mxu1 }
 0x21f   :  { %v1727_v63 = vpop.f32.mrb[5].mxu1 }
 0x220   :  { %v1728_v0 = vadd.f32 %v1727_v63, %v1726_v62  ;;  %v1729_v1 = vpop.f32.mrb[6].mxu1 }
 0x221   :  { %v1730_v2 = vpop.f32.mrb[7].mxu1 }
 0x222   :  { %v1731_v3 = vadd.f32 %v1730_v2, %v1729_v1  ;;  %v1181_v8 = vadd.f32 %v1728_v0, %v544_v5 }
 0x224   :  { %v1184_v12 = vadd.f32 %v1731_v3, %v544_v5 }
 0x23e   :  { %v1748_v6 = vpop.f32.mrb[8].mxu1 }
 0x23f   :  { %v1749_v7 = vpop.f32.mrb[9].mxu1 }
 0x240   :  { %v1750_v9 = vadd.f32 %v1749_v7, %v1748_v6  ;;  %v1751_v10 = vpop.f32.mrb[10].mxu1 }
 0x241   :  { %v1752_v11 = vpop.f32.mrb[11].mxu1 }
 0x242   :  { %v1222_v13 = vadd.f32 %v1750_v9, %v1181_v8  ;;  %v1753_v14 = vadd.f32 %v1752_v11, %v1751_v10 }
 0x244   :  { %v1225_v15 = vadd.f32 %v1753_v14, %v1184_v12  ;;  %v1230_v16 = vmax.f32 %v1222_v13, 0.0 }
 0x246   :  { %v1233_v17 = vmax.f32 %v1225_v15, 0.0 }
 0x248   :  { %v1236_v18 = vpack.c.bf16 %v1233_v17, %v1230_v16 }
 0x25e   :  { %v1137_v35 = vpop.f32.mrb[4].mxu0 }
 0x25f   :  { %v1805_v23 = vadd.f32 %v1137_v35, %v536_v19  ;;  %v1139_v25 = vpop.f32.mrb[5].mxu0 }
 0x260   :  { %v1806_v26 = vadd.f32 %v1139_v25, %v540_v20  ;;  %v1141_v27 = vpop.f32.mrb[6].mxu0 }
 0x261   :  { %v1807_v28 = vadd.f32 %v1141_v27, %v536_v19  ;;  %v1143_v29 = vpop.f32.mrb[7].mxu0  ;;  %v1228_v31 = vmax.f32 %v1805_v23, 0.0 }
 0x262   :  { %v1808_v30 = vadd.f32 %v1143_v29, %v540_v20  ;;  %v1229_v33 = vmax.f32 %v1806_v26, 0.0 }
 0x263   :  { %v1231_v32 = vmax.f32 %v1807_v28, 0.0 }
 0x264   :  { %v1232_v34 = vmax.f32 %v1808_v30, 0.0 }
 0x265   :  { %v1234_v36 = vpack.c.bf16 %v1231_v32, %v1228_v31 }
 0x266   :  { %v1235_v37 = vpack.c.bf16 %v1232_v34, %v1229_v33 }
 0x268   :  { %1468 = vmatprep.mubr.bf16.mxu1 %v1235_v37 }
 0x269   :  { %1469 = vmatmul.mubr.bf16.vlgmr.msra.gmra.mrb[12].mxu1 %v1234_v36 }
 0x26a   :  { %1786 = vmatpush3.bf16.msra.mxu1 %v2020_v38  ;;  %1801 = vmatprep.mubr.msk.bf16.mxu1 %vm2158_vm0, %v2157_v61 }
 0x26b   :  { %1787 = vmatprep.subr.bf16.mxu1 %v2157_v61 }
 0x26e   :  { %1788 = vmatpush3.bf16.msra.mxu1 %v2021_v21 }
 0x26f   :  { %1789 = vmatprep.subr.bf16.mxu1 %v2157_v61 }
 0x272   :  { %1790 = vmatpush3.bf16.msra.mxu1 %v2022_v22 }
 0x273   :  { %1791 = vmatprep.subr.bf16.mxu1 %v2157_v61 }
 0x276   :  { %1792 = vmatpush3.bf16.msra.mxu1 %v2023_v24 }
 0x277   :  { %1793 = vmatprep.subr.bf16.mxu1 %v2157_v61 }
 0x27a   :  { %1794 = vmatpush3.bf16.msra.mxu1 %v2024_v39 }
 0x27b   :  { %1795 = vmatprep.subr.bf16.mxu1 %v2157_v61 }
 0x27e   :  { %1796 = vmatpush3.bf16.msra.mxu1 %v2025_v40 }
 0x27f   :  { %1797 = vmatprep.subr.bf16.mxu1 %v2157_v61 }
 0x282   :  { %1798 = vmatpush3.bf16.msra.mxu1 %v2026_v41 }
 0x283   :  { %1799 = vmatprep.subr.bf16.mxu1 %v2157_v61 }
 0x286   :  { %1800 = vmatpush3.bf16.msra.mxu1 %v2027_v42 }
 0x289   :  { %1802 = vmatmul.mubr.bf16.vlgmr.msra.gmra.mrb[16].mxu1 %v1236_v18 }
 0x33c   :  { %v1770_v43 = vpop.f32.mrb[12].mxu1 }
 0x33d   :  { %v1771_v44 = vpop.f32.mrb[13].mxu1 }
 0x33e   :  { %v1772_v45 = vadd.f32 %v1771_v44, %v1770_v43  ;;  %v1773_v46 = vpop.f32.mrb[14].mxu1 }
 0x33f   :  { %v1774_v47 = vpop.f32.mrb[15].mxu1 }
 0x340   :  { %v1775_v48 = vadd.f32 %v1774_v47, %v1773_v46  ;;  %v1471_v50 = vadd.f32 %v1772_v45, %v1676_v49 }
 0x342   :  { %v1474_v54 = vadd.f32 %v1775_v48, %v1676_v49 }
 0x35c   :  { %v1511_v51 = vpop.f32.mrb[16].mxu1 }
 0x35d   :  { %v1512_v52 = vadd.f32 %v1511_v51, %v1471_v50  ;;  %v1803_v53 = vpop.f32.mrb[17].mxu1 }
 0x35e   :  { %v1514_v55 = vpop.f32.mrb[18].mxu1 }
 0x35f   :  { %v1515_v56 = vadd.f32 %v1514_v55, %v1474_v54  ;;  %v1804_v57 = vpop.f32.mrb[19].mxu1 }
 0x361   :  { %v1708_v58 = vpack.c.bf16 %v1515_v56, %v1512_v52 }
 0x363   :  { %1709 = vst [vmem:[#allocation10] sm:$0xff] %v1708_v58  }
 0x364   :  { %2127 = shalt.err (!%p2124_p8)
}
 0x365   :  { %s2128_s14 = scalar_lea.hbm %s2316_s7, 128 }
 0x366   :  { %p2129_p9 = scmp.ne.s32.totalorder %s2316_s7, %s2128_s14  ;;  %p2132_p10 = scmp.lt.u32.totalorder %s2128_s14, %s2316_s7 }
 0x368   :  { %p2134_p11 = pnand %p2132_p10, %p2129_p9 }
 0x36a   :  { %2137 = shalt.err (!%p2134_p11)
}
 0x36b   :  { %1539 = dma.vmem_to_hbm [thread:$0]  %s1534_s11, 128, %s2316_s7, [#allocation4], %s2150_s1, %s2150_s1, %s2151_s25  }
 0x36c   :  { %2144 = dma.done.wait [#allocation4], 128  }
 0x36d   :  { %2145 = vsyncadd [#allocation4], 4294967168 }
 0x36e   :  { %1543 = vsyncpa [#allocation3], 1 }
 0x36f   :  { %1544 = vsyncpa [#allocation6], 1 }
 0x370   :  { %1545 = vsyncpa [#allocation9], 1 }
 0x371   :  { %1546 = vsyncpa [#allocation4], 1 }

</bundles_post_ra>
